<compile_context>
chip_gen: v7x
topology: tpu7x:2x2x1
jax: 0.10.0
libtpu: 0.0.40
codegen_flags: <defaults>
</compile_context>

<pallas_src>
import functools
import math

import jax
import jax.numpy as jnp
from jax.experimental import pallas as pl
from jax.experimental.pallas import tpu as pltpu

_LANE = 128
_SUBLANE = 8
_MAX_TILE_B = 4096  # keeps tb*128 f32 activations (+bf16 copies) well under VMEM


def _round_up(n, m):
    return ((n + m - 1) // m) * m


# ---------------------------------------------------------------------------
# Kernels
# ---------------------------------------------------------------------------
def _mlp_body(x_ref, w1_ref, b1_ref, w2_ref, b2_ref, w3_ref, b3_ref):
    """relu(x@W1+b1) -> relu(.@W2+b2) -> .@W3+b3, f32 accumulation throughout."""
    # x stays f32 in HBM; cast to the MXU operand dtype in-VMEM (free under
    # DMA/MXU slack).  Bias add / ReLU stay f32 (v5e-safe).
    x = x_ref[...].astype(w1_ref.dtype)
    h1 = jnp.dot(x, w1_ref[...], preferred_element_type=jnp.float32) + b1_ref[...]
    h1 = jnp.maximum(h1, 0.0)
    h2 = jnp.dot(h1.astype(w2_ref.dtype), w2_ref[...],
                 preferred_element_type=jnp.float32) + b2_ref[...]
    h2 = jnp.maximum(h2, 0.0)
    q = jnp.dot(h2.astype(w3_ref.dtype), w3_ref[...],
                preferred_element_type=jnp.float32) + b3_ref[...]
    return q


def _dqn_kernel(x_ref, w1_ref, b1_ref, w2_ref, b2_ref, w3_ref, b3_ref, out_ref):
    q = _mlp_body(x_ref, w1_ref, b1_ref, w2_ref, b2_ref, w3_ref, b3_ref)
    out_ref[...] = q.astype(out_ref.dtype)


def _dqn_argmax_kernel(x_ref, w1_ref, b1_ref, w2_ref, b2_ref, w3_ref, b3_ref,
                       act_ref, *, n_actions):
    # Fused argmax epilogue: write 1 int32 lane per row instead of 128 f32.
    q = _mlp_body(x_ref, w1_ref, b1_ref, w2_ref, b2_ref, w3_ref, b3_ref)
    ap = q.shape[-1]
    col = jax.lax.broadcasted_iota(jnp.int32, q.shape, 1)
    qv = jnp.where(col < n_actions, q, -jnp.inf)        # mask padded actions
    m = jnp.max(qv, axis=-1, keepdims=True)
    # first index attaining the max (min/max reductions only -> lowers cleanly)
    act_ref[...] = jnp.min(jnp.where(qv == m, col, ap), axis=-1, keepdims=True)


# ---------------------------------------------------------------------------
# Host-side helpers
# ---------------------------------------------------------------------------
def init_params(key, input_dim, fc1_dims, fc2_dims, n_actions):
    """torch.nn.Linear-style init U[-1/sqrt(fan_in), +1/sqrt(fan_in)].

    Weights stored [fan_in, fan_out] so the kernel computes y = x @ W + b.
    """
    def linear(k, fan_in, fan_out):
        kw, kb = jax.random.split(k)
        bound = 1.0 / math.sqrt(fan_in)
        w = jax.random.uniform(kw, (fan_in, fan_out), jnp.float32, -bound, bound)
        b = jax.random.uniform(kb, (1, fan_out), jnp.float32, -bound, bound)
        return w, b

    k1, k2, k3 = jax.random.split(key, 3)
    w1, b1 = linear(k1, input_dim, fc1_dims)
    w2, b2 = linear(k2, fc1_dims, fc2_dims)
    w3, b3 = linear(k3, fc2_dims, n_actions)
    return {"w1": w1, "b1": b1, "w2": w2, "b2": b2, "w3": w3, "b3": b3}


def prepare_params(params, compute_dtype=jnp.float32):
    """Zero-pad hidden/action dims to multiples of 128; cast MXU operands.

    The input-feature dim D_in is NOT padded (x is consumed unpadded).
    Padding is exact: padded hidden units get zero weights + zero bias
    (ReLU(0)=0); padded action columns are sliced away by the wrapper.
    Prefer compute_dtype=jnp.bfloat16 on v6e/v7x (MXU bf16, halved DMA);
    elementwise math stays f32 either way (v5e-safe).
    """
    d_in, f1 = params["w1"].shape
    f2 = params["w2"].shape[1]
    na = params["w3"].shape[1]
    f1p, f2p, ap = (_round_up(v, _LANE) for v in (f1, f2, na))

    def pad2(a, rows, cols):
        return jnp.pad(a, ((0, rows - a.shape[0]), (0, cols - a.shape[1])))

    return {
        "w1": pad2(params["w1"], d_in, f1p).astype(compute_dtype),
        "b1": pad2(params["b1"], 1, f1p).astype(jnp.float32),
        "w2": pad2(params["w2"], f1p, f2p).astype(compute_dtype),
        "b2": pad2(params["b2"], 1, f2p).astype(jnp.float32),
        "w3": pad2(params["w3"], f2p, ap).astype(compute_dtype),
        "b3": pad2(params["b3"], 1, ap).astype(jnp.float32),
        "dims": (d_in, f1, f2, na, f1p, f2p, ap),
    }


def _invariant_spec(shape):
    """BlockSpec for a grid-invariant operand: fetched once, single-buffered."""
    try:
        return pl.BlockSpec(shape, lambda i: (0, 0), pipeline_mode=pl.Buffered(1))
    except (TypeError, AttributeError):
        # Older API without pipeline_mode: fall back to default double-buffering.
        return pl.BlockSpec(shape, lambda i: (0, 0))


def _tile_and_specs(B, d_in, f1p, f2p, ap, tile_b):
    # tb: multiple of 8 sublanes, <= ceil(B/2) so >=2 grid steps whenever the
    # batch allows it (v7x megacore), capped for VMEM headroom.
    bp = _round_up(B, _SUBLANE)
    tb = max(_SUBLANE,
             min(_round_up(int(tile_b), _SUBLANE), _MAX_TILE_B,
                 _round_up(pl.cdiv(bp, 2), _SUBLANE)))
    grid_steps = pl.cdiv(B, tb)
    in_specs = [
        pl.BlockSpec((tb, d_in), lambda i: (i, 0)),   # x: tiled over batch, unpadded
        _invariant_spec((d_in, f1p)),                 # w1 (resident)
        _invariant_spec((1, f1p)),                    # b1
        _invariant_spec((f1p, f2p)),                  # w2
        _invariant_spec((1, f2p)),                    # b2
        _invariant_spec((f2p, ap)),                   # w3
        _invariant_spec((1, ap)),                     # b3
    ]
    return tb, grid_steps, in_specs


def _cost_estimate(B, tb, grid_steps, d_in, f1p, f2p, ap, prepared,
                   out_bytes_per_row):
    flops = 2 * grid_steps * tb * (d_in * f1p + f1p * f2p + f2p * ap)
    w_bytes = sum(int(prepared[k].size) * prepared[k].dtype.itemsize
                  for k in ("w1", "w2", "w3"))
    b_bytes = (f1p + f2p + ap) * 4
    bytes_accessed = B * d_in * 4 + w_bytes + b_bytes + B * out_bytes_per_row
    return pl.CostEstimate(flops=int(flops), transcendentals=0,
                           bytes_accessed=int(bytes_accessed))


def dqn_forward(x, prepared, tile_b=1024):
    """Fused DQN forward: returns Q-values [B, n_actions] float32."""
    d_in, _, _, n_actions, f1p, f2p, ap = prepared["dims"]
    B = x.shape[0]
    assert x.shape[1] == d_in

    tb, grid_steps, in_specs = _tile_and_specs(B, d_in, f1p, f2p, ap, tile_b)

    out = pl.pallas_call(
        _dqn_kernel,
        out_shape=jax.ShapeDtypeStruct((B, ap), jnp.float32),
        grid=(grid_steps,),
        in_specs=in_specs,
        out_specs=pl.BlockSpec((tb, ap), lambda i: (i, 0)),   # lane-dense store
        compiler_params=pltpu.CompilerParams(
            dimension_semantics=("parallel",)),
        cost_estimate=_cost_estimate(B, tb, grid_steps, d_in, f1p, f2p, ap,
                                     prepared, out_bytes_per_row=ap * 4),
    )(x, prepared["w1"], prepared["b1"], prepared["w2"], prepared["b2"],
      prepared["w3"], prepared["b3"])
    return out[:, :n_actions]


def dqn_select_action(x, prepared, tile_b=1024):
    """Action-selection path: fused argmax epilogue, returns int32 [B]."""
    d_in, _, _, n_actions, f1p, f2p, ap = prepared["dims"]
    B = x.shape[0]
    assert x.shape[1] == d_in

    tb, grid_steps, in_specs = _tile_and_specs(B, d_in, f1p, f2p, ap, tile_b)
    kernel = functools.partial(_dqn_argmax_kernel, n_actions=n_actions)

    out = pl.pallas_call(
        kernel,
        out_shape=jax.ShapeDtypeStruct((B, 1), jnp.int32),
        grid=(grid_steps,),
        in_specs=in_specs,
        out_specs=pl.BlockSpec((tb, 1), lambda i: (i, 0)),
        compiler_params=pltpu.CompilerParams(
            dimension_semantics=("parallel",)),
        cost_estimate=_cost_estimate(B, tb, grid_steps, d_in, f1p, f2p, ap,
                                     prepared, out_bytes_per_row=4),
    )(x, prepared["w1"], prepared["b1"], prepared["w2"], prepared["b2"],
      prepared["w3"], prepared["b3"])
    return out[:, 0]


def reference_forward(x, p):
    h1 = jnp.maximum(x @ p["w1"] + p["b1"], 0.0)
    h2 = jnp.maximum(h1 @ p["w2"] + p["b2"], 0.0)
    return h2 @ p["w3"] + p["b3"]


# TODO(synk): optimizer (Adam), MSELoss and device placement from the PyTorch
# module are training-side utilities, not part of the forward pass, and are
# intentionally not translated.

# ---------------------------------------------------------------------------
# Demo / self-test
# ---------------------------------------------------------------------------
if __name__ == "__main__":
    # Shapes consistent with DeepQNetwork(lr, input_dims=(8,), 32, 32, 4).
    batch, input_dim, fc1_dims, fc2_dims, n_actions = 2, 8, 32, 32, 4

    key = jax.random.PRNGKey(0)
    kx, kp = jax.random.split(key)
    x = jax.random.normal(kx, (batch, input_dim), jnp.float32)
    params = init_params(kp, input_dim, fc1_dims, fc2_dims, n_actions)
    ref = reference_forward(x, params)

    # f32 path: matches the pure-JAX reference tightly.
    prep_f32 = prepare_params(params, compute_dtype=jnp.float32)
    q_f32 = jax.block_until_ready(dqn_forward(x, prep_f32))
    assert q_f32.shape == (batch, n_actions)
    assert jnp.allclose(q_f32, ref, atol=1e-5, rtol=1e-5)

    # bf16 MXU-operand path (f32 accumulation / elementwise): looser tolerance.
    prep_bf16 = prepare_params(params, compute_dtype=jnp.bfloat16)
    q_bf16 = jax.block_until_ready(dqn_forward(x, prep_bf16))
    assert q_bf16.shape == (batch, n_actions)
    assert jnp.allclose(q_bf16, ref, atol=5e-2, rtol=5e-2)

    # Fused argmax (action-selection) epilogue.
    acts = jax.block_until_ready(dqn_select_action(x, prep_f32))
    assert acts.shape == (batch,)
    assert jnp.array_equal(acts, jnp.argmax(ref, axis=-1).astype(jnp.int32))

    # Non-multiple-of-8 batch with >1 grid step exercises the partial block.
    x2 = jax.random.normal(jax.random.PRNGKey(1), (20, input_dim), jnp.float32)
    q2 = jax.block_until_ready(dqn_forward(x2, prep_f32, tile_b=16))
    assert jnp.allclose(q2, reference_forward(x2, params), atol=1e-5, rtol=1e-5)

    print("KERNEL_OK")
</pallas_src>

<mosaic_0001>
module attributes {stable_mosaic.version = 11 : i64} {
  func.func @_dqn_kernel(%arg0: i32, %arg1: memref<8x8xf32, #tpu.memory_space<vmem>>, %arg2: memref<8x128xf32, #tpu.memory_space<vmem>>, %arg3: memref<1x128xf32, #tpu.memory_space<vmem>>, %arg4: memref<128x128xf32, #tpu.memory_space<vmem>>, %arg5: memref<1x128xf32, #tpu.memory_space<vmem>>, %arg6: memref<128x128xf32, #tpu.memory_space<vmem>>, %arg7: memref<1x128xf32, #tpu.memory_space<vmem>>, %arg8: memref<8x128xf32, #tpu.memory_space<vmem>>) attributes {dimension_semantics = [#tpu.dimension_semantics<parallel>], iteration_bounds = array<i64: 1>, scalar_prefetch = 0 : i64, scratch_operands = 0 : i64, tpu.core_type = #tpu.core_type<tc>, window_params = [{transform_indices = @transform_0, window_bounds = array<i64: 8, 8>}, {pipeline_mode = #tpu.pipeline_mode<synchronous>, transform_indices = @transform_1, window_bounds = array<i64: 8, 128>}, {pipeline_mode = #tpu.pipeline_mode<synchronous>, transform_indices = @transform_2, window_bounds = array<i64: 1, 128>}, {pipeline_mode = #tpu.pipeline_mode<synchronous>, transform_indices = @transform_3, window_bounds = array<i64: 128, 128>}, {pipeline_mode = #tpu.pipeline_mode<synchronous>, transform_indices = @transform_4, window_bounds = array<i64: 1, 128>}, {pipeline_mode = #tpu.pipeline_mode<synchronous>, transform_indices = @transform_5, window_bounds = array<i64: 128, 128>}, {pipeline_mode = #tpu.pipeline_mode<synchronous>, transform_indices = @transform_6, window_bounds = array<i64: 1, 128>}, {transform_indices = @transform_7, window_bounds = array<i64: 8, 128>}]} {
    %c0 = arith.constant 0 : index
    %c0_0 = arith.constant 0 : index
    %0 = vector.load %arg1[%c0, %c0_0] : memref<8x8xf32, #tpu.memory_space<vmem>>, vector<8x8xf32>
    %c0_1 = arith.constant 0 : index
    %c0_2 = arith.constant 0 : index
    %1 = vector.load %arg2[%c0_1, %c0_2] : memref<8x128xf32, #tpu.memory_space<vmem>>, vector<8x128xf32>
    %cst = arith.constant dense<0.000000e+00> : vector<8x128xf32>
    %2 = tpu.matmul %0, %1, %cst {dimension_numbers = #tpu.dot_dimension_numbers<[1], [0], [0], [1], [0, 0, 1, 1], [], []>} : vector<8x8xf32>, vector<8x128xf32>, vector<8x128xf32> -> vector<8x128xf32>
    %c0_3 = arith.constant 0 : index
    %c0_4 = arith.constant 0 : index
    %3 = vector.load %arg3[%c0_3, %c0_4] : memref<1x128xf32, #tpu.memory_space<vmem>>, vector<1x128xf32>
    %4 = vector.broadcast %3 : vector<1x128xf32> to vector<8x128xf32>
    %5 = arith.addf %2, %4 : vector<8x128xf32>
    %cst_5 = arith.constant 0.000000e+00 : f32
    %6 = vector.broadcast %cst_5 : f32 to vector<8x128xf32>
    %7 = arith.maximumf %5, %6 : vector<8x128xf32>
    %c0_6 = arith.constant 0 : index
    %c0_7 = arith.constant 0 : index
    %8 = vector.load %arg4[%c0_6, %c0_7] : memref<128x128xf32, #tpu.memory_space<vmem>>, vector<128x128xf32>
    %cst_8 = arith.constant dense<0.000000e+00> : vector<8x128xf32>
    %9 = tpu.matmul %7, %8, %cst_8 {dimension_numbers = #tpu.dot_dimension_numbers<[1], [0], [0], [1], [0, 0, 1, 1], [], []>} : vector<8x128xf32>, vector<128x128xf32>, vector<8x128xf32> -> vector<8x128xf32>
    %c0_9 = arith.constant 0 : index
    %c0_10 = arith.constant 0 : index
    %10 = vector.load %arg5[%c0_9, %c0_10] : memref<1x128xf32, #tpu.memory_space<vmem>>, vector<1x128xf32>
    %11 = vector.broadcast %10 : vector<1x128xf32> to vector<8x128xf32>
    %12 = arith.addf %9, %11 : vector<8x128xf32>
    %cst_11 = arith.constant 0.000000e+00 : f32
    %13 = vector.broadcast %cst_11 : f32 to vector<8x128xf32>
    %14 = arith.maximumf %12, %13 : vector<8x128xf32>
    %c0_12 = arith.constant 0 : index
    %c0_13 = arith.constant 0 : index
    %15 = vector.load %arg6[%c0_12, %c0_13] : memref<128x128xf32, #tpu.memory_space<vmem>>, vector<128x128xf32>
    %cst_14 = arith.constant dense<0.000000e+00> : vector<8x128xf32>
    %16 = tpu.matmul %14, %15, %cst_14 {dimension_numbers = #tpu.dot_dimension_numbers<[1], [0], [0], [1], [0, 0, 1, 1], [], []>} : vector<8x128xf32>, vector<128x128xf32>, vector<8x128xf32> -> vector<8x128xf32>
    %c0_15 = arith.constant 0 : index
    %c0_16 = arith.constant 0 : index
    %17 = vector.load %arg7[%c0_15, %c0_16] : memref<1x128xf32, #tpu.memory_space<vmem>>, vector<1x128xf32>
    %18 = vector.broadcast %17 : vector<1x128xf32> to vector<8x128xf32>
    %19 = arith.addf %16, %18 : vector<8x128xf32>
    %c0_17 = arith.constant 0 : index
    %c0_18 = arith.constant 0 : index
    %20 = vector.load %arg8[%c0_17, %c0_18] : memref<8x128xf32, #tpu.memory_space<vmem>>, vector<8x128xf32>
    tpu.vector_store %arg8[%c0_17, %c0_18], %19 {strides = array<i32>} : memref<8x128xf32, #tpu.memory_space<vmem>>, vector<8x128xf32>,
    return
  }
  func.func @transform_0(%arg0: i32) -> (i32, i32) {
    %c0_i32 = arith.constant 0 : i32
    %c0_i32_0 = arith.constant 0 : i32
    return %arg0, %c0_i32 : i32, i32
  }
  func.func @transform_1(%arg0: i32) -> (i32, i32) {
    %c0_i32 = arith.constant 0 : i32
    %c0_i32_0 = arith.constant 0 : i32
    %c0_i32_1 = arith.constant 0 : i32
    return %c0_i32, %c0_i32_0 : i32, i32
  }
  func.func @transform_2(%arg0: i32) -> (i32, i32) {
    %c0_i32 = arith.constant 0 : i32
    %c0_i32_0 = arith.constant 0 : i32
    %c0_i32_1 = arith.constant 0 : i32
    return %c0_i32, %c0_i32_0 : i32, i32
  }
  func.func @transform_3(%arg0: i32) -> (i32, i32) {
    %c0_i32 = arith.constant 0 : i32
    %c0_i32_0 = arith.constant 0 : i32
    %c0_i32_1 = arith.constant 0 : i32
    return %c0_i32, %c0_i32_0 : i32, i32
  }
  func.func @transform_4(%arg0: i32) -> (i32, i32) {
    %c0_i32 = arith.constant 0 : i32
    %c0_i32_0 = arith.constant 0 : i32
    %c0_i32_1 = arith.constant 0 : i32
    return %c0_i32, %c0_i32_0 : i32, i32
  }
  func.func @transform_5(%arg0: i32) -> (i32, i32) {
    %c0_i32 = arith.constant 0 : i32
    %c0_i32_0 = arith.constant 0 : i32
    %c0_i32_1 = arith.constant 0 : i32
    return %c0_i32, %c0_i32_0 : i32, i32
  }
  func.func @transform_6(%arg0: i32) -> (i32, i32) {
    %c0_i32 = arith.constant 0 : i32
    %c0_i32_0 = arith.constant 0 : i32
    %c0_i32_1 = arith.constant 0 : i32
    return %c0_i32, %c0_i32_0 : i32, i32
  }
  func.func @transform_7(%arg0: i32) -> (i32, i32) {
    %c0_i32 = arith.constant 0 : i32
    %c0_i32_0 = arith.constant 0 : i32
    return %arg0, %c0_i32 : i32, i32
  }
}

</mosaic_0001>

<bundles_post_ra>
// kernel: tpu_custom_call.1
= control target key start
LH: loop header
LB: loop body
LE: loop exit
PB: predicated region body
PF: predicated region fallthrough
CT: control target
= control target key end

     0   :  { %12 = vsyncpa [#allocation3], 0  ;;  %s818_s0 = inlined_call_operand.hbm [shape: f32[2,8], index: 0, kind: input, shape index: {}]   ;;  %s819_s1 = inlined_call_operand.hbm [shape: f32[8,128], index: 1, kind: input, shape index: {}]   ;;  %s820_s2 = inlined_call_operand.vmem [shape: f32[1,128], index: 2, kind: input, shape index: {}]   ;;  %s821_s3 = inlined_call_operand.hbm [shape: f32[128,128], index: 3, kind: input, shape index: {}]   ;;  %s822_s4 = inlined_call_operand.vmem [shape: f32[1,128], index: 4, kind: input, shape index: {}]   ;;  %s823_s5 = inlined_call_operand.hbm [shape: f32[128,128], index: 5, kind: input, shape index: {}]   ;;  %s824_s6 = inlined_call_operand.vmem [shape: f32[1,128], index: 6, kind: input, shape index: {}]   ;;  %s825_s7 = inlined_call_operand.hbm [shape: f32[2,128], index: 7, kind: output, shape index: {}]  }
   0x1   :  { %13 = vsyncpa [#allocation6], 0 }
   0x2   :  { %14 = vsyncpa [#allocation9], 0 }
   0x3   :  { %15 = vsyncpa [#allocation4], 0 }
   0x4   :  { %20 = vsyncadd [#allocation3], 96  ;;  %s664_s24 = smov [#allocation5]   ;;  %s665_s26 = smov [#allocation2]  }
   0x5   :  { %s34_s25 = sshll.u32 %s664_s24, 4  ;;  %s21_s27 = sshll.u32 %s665_s26, 4  ;;  %s35_s25 = int_to_ptr.vmem [resolvable:$true] %s34_s25  ;;  %s716_s27 = int_to_ptr.vmem [resolvable:$true] %s21_s27 }
   0x6   :  { %s546_s30 = scalar_lea.hbm %s819_s1, 128 }
   0x7   :  { %p547_p0 = scmp.ne.s32.totalorder %s819_s1, %s546_s30  ;;  %p550_p1 = scmp.lt.u32.totalorder %s546_s30, %s819_s1 }
   0x9   :  { %p552_p2 = pnand %p550_p1, %p547_p0 }
   0xb   :  { %555 = shalt.err (!%p552_p2)
}
   0xc   :  { %s556_s12 = scalar_lea.vmem %s35_s25, 128  ;;  %p561_p4 = scmp.lt.s32.totalorder %s35_s25, %s35_s25 }
   0xd   :  { %p557_p3 = scmp.ne.s32.totalorder %s35_s25, %s556_s12  ;;  %p562_p5 = scmp.lt.s32.totalorder %s556_s12, %s556_s12 }
   0xf   :  { %p563_p6 = por %p562_p5, %p561_p4 }
  0x11   :  { %p564_p7 = pnand %p563_p6, %p557_p3 }
  0x13   :  { %567 = shalt.err (!%p564_p7)
}
  0x14   :  { %37 = dma.hbm_to_vmem [thread:$0]  %s819_s1, 128, %s35_s25, [#allocation6]  }
  0x15   :  { %s568_s17 = scalar_lea.hbm %s818_s0, 32 }
  0x16   :  { %p569_p8 = scmp.ne.s32.totalorder %s818_s0, %s568_s17  ;;  %p572_p9 = scmp.lt.u32.totalorder %s568_s17, %s818_s0 }
  0x18   :  { %p574_p10 = pnand %p572_p9, %p569_p8 }
  0x1a   :  { %577 = shalt.err (!%p574_p10)
}
  0x1b   :  { %s578_s22 = scalar_lea.vmem %s716_s27, 32  ;;  %s582_s1 = scalar_lea.vmem %s716_s27, 128 }
  0x1c   :  { %p579_p11 = scmp.ne.s32.totalorder %s716_s27, %s578_s22  ;;  %p583_p12 = scmp.lt.s32.totalorder %s716_s27, %s716_s27 }
  0x1d   :  { %p584_p13 = scmp.lt.s32.totalorder %s582_s1, %s578_s22 }
  0x1f   :  { %p585_p0 = por %p584_p13, %p583_p12 }
  0x21   :  { %p586_p1 = pnand %p585_p0, %p579_p11 }
  0x23   :  { %589 = shalt.err (!%p586_p1)
}
  0x24   :  { %s666_s23 = smov 32   ;;  %s667_s24 = smov 2  }
  0x25   :  { %27 = dma.hbm_to_vmem [thread:$0]  %s818_s0, 32, %s716_s27, [#allocation3], %s666_s23, %s666_s23, %s667_s24  }
  0x26   :  { %s668_s28 = smov [#allocation7]   ;;  %s590_s9 = scalar_lea.hbm %s821_s3, 2048 }
  0x27   :  { %s45_s29 = sshll.u32 %s668_s28, 4  ;;  %p591_p2 = scmp.ne.s32.totalorder %s821_s3, %s590_s9  ;;  %s46_s29 = int_to_ptr.vmem [resolvable:$true] %s45_s29 }
  0x28   :  { %p594_p3 = scmp.lt.u32.totalorder %s590_s9, %s821_s3 }
  0x2a   :  { %p596_p4 = pnand %p594_p3, %p591_p2 }
  0x2c   :  { %599 = shalt.err (!%p596_p4)
}
  0x2d   :  { %s600_s14 = scalar_lea.vmem %s46_s29, 2048  ;;  %p605_p6 = scmp.lt.s32.totalorder %s46_s29, %s46_s29 }
  0x2e   :  { %p601_p5 = scmp.ne.s32.totalorder %s46_s29, %s600_s14  ;;  %p606_p7 = scmp.lt.s32.totalorder %s600_s14, %s600_s14 }
  0x30   :  { %p607_p8 = por %p606_p7, %p605_p6 }
  0x32   :  { %p608_p9 = pnand %p607_p8, %p601_p5 }
  0x34   :  { %611 = shalt.err (!%p608_p9)
}
  0x35   :  { %s669_s0 = smov 128   ;;  %s670_s27 = smov 8  }
  0x36   :  { %51 = dma.hbm_to_vmem [thread:$0]  %s821_s3, 2048, %s46_s29, [#allocation6], %s669_s0, %s669_s0, %s670_s27  }
  0x37   :  { %s671_s17 = smov [#allocation8]   ;;  %s612_s21 = scalar_lea.hbm %s823_s5, 2048 }
  0x38   :  { %s59_s18 = sshll.u32 %s671_s17, 4  ;;  %p613_p10 = scmp.ne.s32.totalorder %s823_s5, %s612_s21  ;;  %s60_s18 = int_to_ptr.vmem [resolvable:$true] %s59_s18 }
  0x39   :  { %p616_p11 = scmp.lt.u32.totalorder %s612_s21, %s823_s5 }
  0x3b   :  { %p618_p12 = pnand %p616_p11, %p613_p10 }
  0x3d   :  { %621 = shalt.err (!%p618_p12)
}
  0x3e   :  { %s622_s28 = scalar_lea.vmem %s60_s18, 2048  ;;  %p627_p0 = scmp.lt.s32.totalorder %s60_s18, %s60_s18 }
  0x3f   :  { %p623_p13 = scmp.ne.s32.totalorder %s60_s18, %s622_s28  ;;  %p628_p1 = scmp.lt.s32.totalorder %s622_s28, %s622_s28 }
  0x41   :  { %p629_p2 = por %p628_p1, %p627_p0 }
  0x43   :  { %p630_p3 = pnand %p629_p2, %p623_p13 }
  0x45   :  { %633 = shalt.err (!%p630_p3)
}
  0x46   :  { %65 = dma.hbm_to_vmem [thread:$0]  %s823_s5, 2048, %s60_s18, [#allocation9], %s669_s0, %s669_s0, %s670_s27  }
  0x47   :  { %656 = dma.done.wait [#allocation3], 128  }
  0x48   :  { %657 = vsyncadd [#allocation3], 4294967168 }
  0x49   :  { %658 = dma.done.wait [#allocation6], 2176  }
  0x4a   :  { %659 = vsyncadd [#allocation6], 4294965120 }
  0x4b   :  { %660 = dma.done.wait [#allocation9], 2048  }
  0x4c   :  { %661 = vsyncadd [#allocation9], 4294965248  ;;  %v672_v0 = vmov 0.0   ;;  %vm673_vm0 = vmmov 0   ;;  %v674_v1 = vmov 0.0|0.0   ;;  %vm89_vm1 = vcmask 64512  }
  0x4d   :  { %411 = vmatprep.subr.mxu0 %v672_v0  ;;  %413 = vmatprep.mubr.msk.f32.mxu0 %vm673_vm0, %v672_v0  ;;  %v81_v2 = vld [vmem:[#allocation5] sm:$0xff]  ;;  %v80_v3 = vld [vmem:[#allocation2] sm:$0xff]  ;;  %v164_v4 = vld [vmem:[#allocation7] sm:$0xff] }
  0x4e   :  { %486 = vmatprep.subr.bf16.mxu1 %v674_v1  ;;  %448 = vmatprep.mubr.msk.f32.mxu1 %vm673_vm0, %v672_v0  ;;  %v165_v5 = vld [vmem:[#allocation7 + $0x8] sm:$0xff]  ;;  %v166_v6 = vld [vmem:[#allocation7 + $0x10] sm:$0xff]  ;;  %v167_v7 = vld [vmem:[#allocation7 + $0x18] sm:$0xff] }
  0x4f   :  { %412 = vmatpush3.msra.mxu0 %v81_v2  ;;  %v487_v8 = vpack.c.bf16 %v165_v5, %v164_v4  ;;  %v490_v9 = vpack.c.bf16 %v167_v7, %v166_v6  ;;  %v168_v10 = vld [vmem:[#allocation7 + $0x20] sm:$0xff]  ;;  %v169_v11 = vld [vmem:[#allocation7 + $0x28] sm:$0xff]  ;;  %v170_v13 = vld [vmem:[#allocation7 + $0x30] sm:$0xff] }
  0x50   :  { %414 = vmatmul.mubr.msk.f32.vlgmr.msra.gmra.mrb[0].mxu0 %vm89_vm1, %v80_v3  ;;  %510 = vmatprep.subr.bf16.mxu0 %v674_v1  ;;  %v493_v12 = vpack.c.bf16 %v169_v11, %v168_v10  ;;  %v171_v14 = vld [vmem:[#allocation7 + $0x38] sm:$0xff]  ;;  %v172_v16 = vld [vmem:[#allocation7 + $0x40] sm:$0xff]  ;;  %v173_v17 = vld [vmem:[#allocation7 + $0x48] sm:$0xff] }
  0x51   :  { %483 = vmatprep.mubr.msk.f32.mxu0 %vm673_vm0, %v672_v0  ;;  %488 = vmatpush3.bf16.msra.mxu1 %v487_v8  ;;  %v496_v15 = vpack.c.bf16 %v171_v14, %v170_v13  ;;  %v499_v18 = vpack.c.bf16 %v173_v17, %v172_v16  ;;  %v174_v19 = vld [vmem:[#allocation7 + $0x50] sm:$0xff]  ;;  %v175_v20 = vld [vmem:[#allocation7 + $0x58] sm:$0xff]  ;;  %v176_v22 = vld [vmem:[#allocation7 + $0x60] sm:$0xff] }
  0x52   :  { %489 = vmatprep.subr.bf16.mxu1 %v674_v1  ;;  %v502_v21 = vpack.c.bf16 %v175_v20, %v174_v19  ;;  %v177_v23 = vld [vmem:[#allocation7 + $0x68] sm:$0xff]  ;;  %v178_v25 = vld [vmem:[#allocation7 + $0x70] sm:$0xff]  ;;  %v179_v26 = vld [vmem:[#allocation7 + $0x78] sm:$0xff] }
  0x53   :  { %v505_v24 = vpack.c.bf16 %v177_v23, %v176_v22  ;;  %v508_v27 = vpack.c.bf16 %v179_v26, %v178_v25  ;;  %v258_v28 = vld [vmem:[#allocation8] sm:$0xff]  ;;  %v259_v29 = vld [vmem:[#allocation8 + $0x8] sm:$0xff]  ;;  %v260_v30 = vld [vmem:[#allocation8 + $0x10] sm:$0xff] }
  0x54   :  { %v511_v31 = vpack.c.bf16 %v259_v29, %v258_v28  ;;  %v261_v32 = vld [vmem:[#allocation8 + $0x18] sm:$0xff]  ;;  %v262_v34 = vld [vmem:[#allocation8 + $0x20] sm:$0xff]  ;;  %v263_v35 = vld [vmem:[#allocation8 + $0x28] sm:$0xff] }
  0x55   :  { %491 = vmatpush3.bf16.msra.mxu1 %v490_v9  ;;  %v514_v33 = vpack.c.bf16 %v261_v32, %v260_v30  ;;  %v517_v36 = vpack.c.bf16 %v263_v35, %v262_v34  ;;  %v264_v37 = vld [vmem:[#allocation8 + $0x30] sm:$0xff]  ;;  %v265_v38 = vld [vmem:[#allocation8 + $0x38] sm:$0xff]  ;;  %v266_v40 = vld [vmem:[#allocation8 + $0x40] sm:$0xff] }
  0x56   :  { %492 = vmatprep.subr.bf16.mxu1 %v674_v1  ;;  %512 = vmatpush3.bf16.msra.mxu0 %v511_v31  ;;  %v520_v39 = vpack.c.bf16 %v265_v38, %v264_v37  ;;  %v267_v41 = vld [vmem:[#allocation8 + $0x48] sm:$0xff]  ;;  %v268_v43 = vld [vmem:[#allocation8 + $0x50] sm:$0xff]  ;;  %v269_v44 = vld [vmem:[#allocation8 + $0x58] sm:$0xff] }
  0x57   :  { %513 = vmatprep.subr.bf16.mxu0 %v674_v1  ;;  %v523_v42 = vpack.c.bf16 %v267_v41, %v266_v40  ;;  %v526_v45 = vpack.c.bf16 %v269_v44, %v268_v43  ;;  %v270_v46 = vld [vmem:[#allocation8 + $0x60] sm:$0xff]  ;;  %v271_v47 = vld [vmem:[#allocation8 + $0x68] sm:$0xff]  ;;  %v371_v49 = vld [vmem:[%s820_s2] ss:$0 sm:$0xff] }
  0x58   :  { %v529_v48 = vpack.c.bf16 %v271_v47, %v270_v46  ;;  %v272_v54 = vld [vmem:[#allocation8 + $0x70] sm:$0xff]  ;;  %v273_v55 = vld [vmem:[#allocation8 + $0x78] sm:$0xff] }
  0x59   :  { %494 = vmatpush3.bf16.msra.mxu1 %v493_v12  ;;  %v532_v56 = vpack.c.bf16 %v273_v55, %v272_v54  ;;  %v373_v57 = vld [vmem:[%s822_s4] ss:$0 sm:$0xff] }
  0x5a   :  { %495 = vmatprep.subr.bf16.mxu1 %v674_v1  ;;  %515 = vmatpush3.bf16.msra.mxu0 %v514_v33  ;;  %v374_v62 = vld [vmem:[%s824_s6] ss:$0 sm:$0xff] }
  0x5b   :  { %516 = vmatprep.subr.bf16.mxu0 %v674_v1 }
  0x5d   :  { %497 = vmatpush3.bf16.msra.mxu1 %v496_v15 }
  0x5e   :  { %498 = vmatprep.subr.bf16.mxu1 %v674_v1  ;;  %518 = vmatpush3.bf16.msra.mxu0 %v517_v36 }
  0x5f   :  { %519 = vmatprep.subr.bf16.mxu0 %v674_v1 }
  0x61   :  { %500 = vmatpush3.bf16.msra.mxu1 %v499_v18 }
  0x62   :  { %501 = vmatprep.subr.bf16.mxu1 %v674_v1  ;;  %521 = vmatpush3.bf16.msra.mxu0 %v520_v39 }
  0x63   :  { %522 = vmatprep.subr.bf16.mxu0 %v674_v1 }
  0x65   :  { %503 = vmatpush3.bf16.msra.mxu1 %v502_v21 }
  0x66   :  { %504 = vmatprep.subr.bf16.mxu1 %v674_v1  ;;  %524 = vmatpush3.bf16.msra.mxu0 %v523_v42 }
  0x67   :  { %525 = vmatprep.subr.bf16.mxu0 %v674_v1 }
  0x69   :  { %506 = vmatpush3.bf16.msra.mxu1 %v505_v24 }
  0x6a   :  { %507 = vmatprep.subr.bf16.mxu1 %v674_v1  ;;  %527 = vmatpush3.bf16.msra.mxu0 %v526_v45 }
  0x6b   :  { %528 = vmatprep.subr.bf16.mxu0 %v674_v1 }
  0x6d   :  { %509 = vmatpush3.bf16.msra.mxu1 %v508_v27 }
  0x6e   :  { %530 = vmatpush3.bf16.msra.mxu0 %v529_v48 }
  0x6f   :  { %531 = vmatprep.subr.bf16.mxu0 %v674_v1 }
  0x72   :  { %533 = vmatpush3.bf16.msra.mxu0 %v532_v56 }
 0x123   :  { %v159_v50 = vpop.f32.mrb[0].mxu0 }
 0x124   :  { %v160_v51 = vadd.f32 %v371_v49, %v159_v50  ;;  %v415_v52 = vpop.f32.mrb[1].mxu0 }
 0x126   :  { %v163_v53 = vmax.f32 %v160_v51, 0.0 }
 0x128   :  { %449 = vmatmul.mubr.f32.vlgmr.msra.gmra.mrb[0].mxu1 %v163_v53 }
 0x1fb   :  { %v253_v58 = vpop.f32.mrb[0].mxu1 }
 0x1fc   :  { %v254_v59 = vadd.f32 %v373_v57, %v253_v58  ;;  %v450_v60 = vpop.f32.mrb[1].mxu1 }
 0x1fe   :  { %v257_v61 = vmax.f32 %v254_v59, 0.0 }
 0x200   :  { %484 = vmatmul.mubr.f32.vlgmr.msra.gmra.mrb[2].mxu0 %v257_v61 }
 0x2d3   :  { %v347_v63 = vpop.f32.mrb[2].mxu0 }
 0x2d4   :  { %v348_v0 = vadd.f32 %v374_v62, %v347_v63  ;;  %v485_v1 = vpop.f32.mrb[3].mxu0 }
 0x2d6   :  { %351 = vst [vmem:[#allocation10] sm:$0xff] %v348_v0 }
 0x2d7   :  { %356 = vsyncadd [#allocation4], 96  ;;  %s675_s11 = smov [#allocation10]  }
 0x2d8   :  { %s357_s12 = sshll.u32 %s675_s11, 4  ;;  %s358_s12 = int_to_ptr.vmem [resolvable:$true] %s357_s12 }
 0x2d9   :  { %s634_s13 = scalar_lea.vmem %s358_s12, 32  ;;  %s638_s4 = scalar_lea.vmem %s358_s12, 128 }
 0x2da   :  { %p635_p4 = scmp.ne.s32.totalorder %s358_s12, %s634_s13  ;;  %p639_p5 = scmp.lt.s32.totalorder %s358_s12, %s358_s12 }
 0x2db   :  { %p640_p6 = scmp.lt.s32.totalorder %s638_s4, %s634_s13 }
 0x2dd   :  { %p641_p7 = por %p640_p6, %p639_p5 }
 0x2df   :  { %p642_p8 = pnand %p641_p7, %p635_p4 }
 0x2e1   :  { %645 = shalt.err (!%p642_p8)
}
 0x2e2   :  { %s646_s6 = scalar_lea.hbm %s825_s7, 32 }
 0x2e3   :  { %p647_p9 = scmp.ne.s32.totalorder %s825_s7, %s646_s6  ;;  %p650_p10 = scmp.lt.u32.totalorder %s646_s6, %s825_s7 }
 0x2e5   :  { %p652_p11 = pnand %p650_p10, %p647_p9 }
 0x2e7   :  { %655 = shalt.err (!%p652_p11)
}
 0x2e8   :  { %363 = dma.vmem_to_hbm [thread:$0]  %s358_s12, 32, %s825_s7, [#allocation4], %s666_s23, %s666_s23, %s667_s24  }
 0x2e9   :  { %662 = dma.done.wait [#allocation4], 128  }
 0x2ea   :  { %663 = vsyncadd [#allocation4], 4294967168 }
 0x2eb   :  { %367 = vsyncpa [#allocation3], 1 }
 0x2ec   :  { %368 = vsyncpa [#allocation6], 1 }
 0x2ed   :  { %369 = vsyncpa [#allocation9], 1 }
 0x2ee   :  { %370 = vsyncpa [#allocation4], 1 }

</bundles_post_ra>
